<compile_context>
chip_gen: v6e
topology: v6e:2x2x1
jax: 0.10.0
libtpu: 0.0.40
codegen_flags: <defaults>
</compile_context>

<pallas_src>
import functools

import jax
import jax.numpy as jnp
from jax.experimental import pallas as pl
from jax.experimental.pallas import tpu as pltpu


def _ffn_kernel(x_ref, w13_ref, w2_ref, o_ref, acc_ref, *, th):
    """One (tm, dim) row block x one hidden tile of size th.

    x_ref:   (tm, dim)     bf16
    w13_ref: (dim, 2*th)   bf16   columns = [w1 tile | w3 tile]
    w2_ref:  (th, dim)     bf16
    o_ref:   (tm, dim)     output dtype
    acc_ref: (tm, dim)     f32 scratch accumulator (resident across hidden axis)
    """
    h = pl.program_id(1)

    @pl.when(h == 0)
    def _():
        acc_ref[...] = jnp.zeros_like(acc_ref)

    # One fused MXU pass for both gate projections.
    h13 = jnp.dot(x_ref[...], w13_ref[...],
                  preferred_element_type=jnp.float32)        # (tm, 2*th) f32
    h1 = h13[:, :th]
    h3 = h13[:, th:]
    g = (h1 * jax.nn.sigmoid(h1)) * h3                       # SwiGLU in f32

    acc_ref[...] += jnp.dot(g.astype(w2_ref.dtype), w2_ref[...],
                            preferred_element_type=jnp.float32)

    @pl.when(h == pl.num_programs(1) - 1)
    def _():
        o_ref[...] = acc_ref[...].astype(o_ref.dtype)


def _pick_hidden_tile(hidden):
    for th in (1024, 512, 256, 128):
        if hidden % th == 0:
            return th
    return hidden


def prepare_ffn_weights(w1, w2, w3, *, th=None, compute_dtype=jnp.bfloat16):
    """One-time weight prep (hoisted out of the forward hot path).

    w1, w3: (hidden, dim), w2: (dim, hidden)  -- PyTorch nn.Linear layout.
    Returns (w13, w2t, th) where
      w13: (dim, 2*hidden) with per-hidden-tile layout [w1 tile | w3 tile] so
           one BlockSpec block feeds a single fused gate matmul.
      w2t: (hidden, dim)
    """
    hidden, dim = w1.shape
    if th is None:
        th = _pick_hidden_tile(hidden)
    assert hidden % th == 0, (hidden, th)
    assert th % 128 == 0, th
    nh = hidden // th

    w1t = w1.T.astype(compute_dtype)          # (dim, hidden)
    w3t = w3.T.astype(compute_dtype)          # (dim, hidden)
    w13 = jnp.stack(
        [w1t.reshape(dim, nh, th), w3t.reshape(dim, nh, th)], axis=2
    ).reshape(dim, nh * 2 * th)               # (dim, 2*hidden), tile-interleaved
    w2t = w2.T.astype(compute_dtype)          # (hidden, dim)
    return w13, w2t, th


def feed_forward(x, w13, w2t, th, *, tm=128):
    """x: (batch, seq, dim). w13 / w2t / th come from prepare_ffn_weights()."""
    batch, seq, dim = x.shape
    hidden = w2t.shape[0]
    nh = hidden // th
    assert w13.shape == (dim, 2 * hidden)

    out_dtype = x.dtype
    M = batch * seq
    m_tiles = pl.cdiv(M, tm)
    m_pad = m_tiles * tm

    x2d = x.reshape(M, dim).astype(jnp.bfloat16)
    if m_pad != M:
        x2d = jnp.pad(x2d, ((0, m_pad - M), (0, 0)))

    # VMEM budget: double-buffered tiles + scratch, with headroom.
    out_bytes = jnp.dtype(out_dtype).itemsize
    vmem_need = (
        2 * tm * dim * 2            # x tiles (bf16)
        + 2 * dim * 2 * th * 2      # fused gate-weight tiles
        + 2 * th * dim * 2          # w2 tiles
        + 2 * tm * dim * out_bytes  # output tiles
        + tm * dim * 4              # f32 accumulator scratch
        + tm * 2 * th * 4           # f32 gate intermediates
    )
    vmem_limit = int(min(128 * 1024 * 1024,
                         max(32 * 1024 * 1024, 1.5 * vmem_need)))

    cost = pl.CostEstimate(
        flops=6 * M * dim * hidden,
        transcendentals=M * hidden,
        bytes_accessed=(m_tiles * 3 * dim * hidden * 2
                        + M * dim * (2 + out_bytes)),
    )

    out2d = pl.pallas_call(
        functools.partial(_ffn_kernel, th=th),
        out_shape=jax.ShapeDtypeStruct((m_pad, dim), out_dtype),
        grid_spec=pltpu.PrefetchScalarGridSpec(
            num_scalar_prefetch=0,
            grid=(m_tiles, nh),
            in_specs=[
                pl.BlockSpec((tm, dim), lambda i, h: (i, 0)),
                pl.BlockSpec((dim, 2 * th), lambda i, h: (0, h)),
                pl.BlockSpec((th, dim), lambda i, h: (h, 0)),
            ],
            out_specs=pl.BlockSpec((tm, dim), lambda i, h: (i, 0)),
            scratch_shapes=[pltpu.VMEM((tm, dim), jnp.float32)],
        ),
        compiler_params=pltpu.CompilerParams(
            dimension_semantics=("parallel", "arbitrary"),
            vmem_limit_bytes=vmem_limit,
        ),
        cost_estimate=cost,
    )(x2d, w13, w2t)

    if m_pad != M:
        out2d = out2d[:M]
    return out2d.reshape(batch, seq, dim)


def _llama_hidden_dim(dim: int, hidden_dim: int, multiple_of: int) -> int:
    hidden_dim = int(2 * hidden_dim / 3)
    hidden_dim = multiple_of * ((hidden_dim + multiple_of - 1) // multiple_of)
    return hidden_dim


if __name__ == "__main__":
    # Module config: dim=128, hidden_dim=4*dim, multiple_of=128 -> hidden=256.
    dim = 128
    hidden = _llama_hidden_dim(dim, 4 * dim, 128)   # 256

    batch, seq = 2, 120          # M = 240: exercises the remainder/pad path
    key = jax.random.PRNGKey(0)
    kx, k1, k2, k3 = jax.random.split(key, 4)

    x = jax.random.normal(kx, (batch, seq, dim), dtype=jnp.float32)
    # PyTorch nn.Linear weight layout: (out_features, in_features)
    w1 = jax.random.normal(k1, (hidden, dim), dtype=jnp.float32) * 0.02
    w2 = jax.random.normal(k2, (dim, hidden), dtype=jnp.float32) * 0.02
    w3 = jax.random.normal(k3, (hidden, dim), dtype=jnp.float32) * 0.02

    # One-time weight prep; th=128 forces 2 hidden-axis grid steps so the
    # accumulator (pl.when init / finalize) path is exercised.
    w13, w2t, th = prepare_ffn_weights(w1, w2, w3, th=128)
    out = jax.block_until_ready(feed_forward(x, w13, w2t, th, tm=128))

    # Pure-JAX f32 reference (same semantics as the PyTorch module).
    h1 = x @ w1.T
    ref = (h1 * jax.nn.sigmoid(h1) * (x @ w3.T)) @ w2.T

    assert out.shape == (batch, seq, dim)
    # bf16 matmul operands with f32 accumulation -> loosened tolerance.
    assert jnp.allclose(out, ref, atol=3e-3, rtol=3e-2), \
        float(jnp.max(jnp.abs(out - ref)))

    print("KERNEL_OK")
</pallas_src>

<mosaic_0001>
module attributes {stable_mosaic.version = 11 : i64} {
  func.func @_ffn_kernel(%arg0: i32, %arg1: i32, %arg2: memref<128x128xbf16, #tpu.memory_space<vmem>>, %arg3: memref<128x256xbf16, #tpu.memory_space<vmem>>, %arg4: memref<128x128xbf16, #tpu.memory_space<vmem>>, %arg5: memref<128x128xf32, #tpu.memory_space<vmem>>, %arg6: memref<128x128xf32, #tpu.memory_space<vmem>>) attributes {dimension_semantics = [#tpu.dimension_semantics<parallel>, #tpu.dimension_semantics<arbitrary>], iteration_bounds = array<i64: 2, 3>, scalar_prefetch = 0 : i64, scratch_operands = 1 : i64, tpu.core_type = #tpu.core_type<tc>, window_params = [{transform_indices = @transform_0, window_bounds = array<i64: 128, 128>}, {transform_indices = @transform_1, window_bounds = array<i64: 128, 256>}, {transform_indices = @transform_2, window_bounds = array<i64: 128, 128>}, {transform_indices = @transform_3, window_bounds = array<i64: 128, 128>}]} {
    %c0_i32 = arith.constant 0 : i32
    %0 = arith.cmpi eq, %arg1, %c0_i32 : i32
    %1 = arith.extui %0 : i1 to i32
    %c0_i32_0 = arith.constant 0 : i32
    %2 = arith.cmpi ne, %1, %c0_i32_0 : i32
    scf.if %2 {
      %cst_13 = arith.constant 0.000000e+00 : f32
      %24 = vector.broadcast %cst_13 : f32 to vector<128x128xf32>
      %c0_14 = arith.constant 0 : index
      %c0_15 = arith.constant 0 : index
      %25 = vector.load %arg6[%c0_14, %c0_15] : memref<128x128xf32, #tpu.memory_space<vmem>>, vector<128x128xf32>
      tpu.vector_store %arg6[%c0_14, %c0_15], %24 {strides = array<i32>} : memref<128x128xf32, #tpu.memory_space<vmem>>, vector<128x128xf32>,
    } else {
    }
    %c0 = arith.constant 0 : index
    %c0_1 = arith.constant 0 : index
    %3 = vector.load %arg2[%c0, %c0_1] : memref<128x128xbf16, #tpu.memory_space<vmem>>, vector<128x128xbf16>
    %c0_2 = arith.constant 0 : index
    %c0_3 = arith.constant 0 : index
    %4 = vector.load %arg3[%c0_2, %c0_3] : memref<128x256xbf16, #tpu.memory_space<vmem>>, vector<128x256xbf16>
    %cst = arith.constant dense<0.000000e+00> : vector<128x256xf32>
    %5 = tpu.matmul %3, %4, %cst {dimension_numbers = #tpu.dot_dimension_numbers<[1], [0], [0], [1], [0, 0, 1, 1], [], []>} : vector<128x128xbf16>, vector<128x256xbf16>, vector<128x256xf32> -> vector<128x256xf32>
    %6 = vector.extract_strided_slice %5 {offsets = [0, 0], sizes = [128, 128], strides = [1, 1]} : vector<128x256xf32> to vector<128x128xf32>
    %7 = vector.extract_strided_slice %5 {offsets = [0, 128], sizes = [128, 128], strides = [1, 1]} : vector<128x256xf32> to vector<128x128xf32>
    %8 = arith.negf %6 : vector<128x128xf32>
    %9 = math.exp %8 : vector<128x128xf32>
    %cst_4 = arith.constant 1.000000e+00 : f32
    %10 = vector.broadcast %cst_4 : f32 to vector<128x128xf32>
    %11 = arith.addf %10, %9 : vector<128x128xf32>
    %12 = arith.divf %10, %11 : vector<128x128xf32>
    %13 = arith.mulf %6, %12 : vector<128x128xf32>
    %14 = arith.mulf %13, %7 : vector<128x128xf32>
    %c0_5 = arith.constant 0 : index
    %c0_6 = arith.constant 0 : index
    %15 = vector.load %arg6[%c0_5, %c0_6] : memref<128x128xf32, #tpu.memory_space<vmem>>, vector<128x128xf32>
    %16 = arith.truncf %14 : vector<128x128xf32> to vector<128x128xbf16>
    %c0_7 = arith.constant 0 : index
    %c0_8 = arith.constant 0 : index
    %17 = vector.load %arg4[%c0_7, %c0_8] : memref<128x128xbf16, #tpu.memory_space<vmem>>, vector<128x128xbf16>
    %cst_9 = arith.constant dense<0.000000e+00> : vector<128x128xf32>
    %18 = tpu.matmul %16, %17, %cst_9 {dimension_numbers = #tpu.dot_dimension_numbers<[1], [0], [0], [1], [0, 0, 1, 1], [], []>} : vector<128x128xbf16>, vector<128x128xbf16>, vector<128x128xf32> -> vector<128x128xf32>
    %19 = arith.addf %15, %18 : vector<128x128xf32>
    %c0_10 = arith.constant 0 : index
    %c0_11 = arith.constant 0 : index
    %20 = vector.load %arg6[%c0_10, %c0_11] : memref<128x128xf32, #tpu.memory_space<vmem>>, vector<128x128xf32>
    tpu.vector_store %arg6[%c0_10, %c0_11], %19 {strides = array<i32>} : memref<128x128xf32, #tpu.memory_space<vmem>>, vector<128x128xf32>,
    %c2_i32 = arith.constant 2 : i32
    %21 = arith.cmpi eq, %arg1, %c2_i32 : i32
    %22 = arith.extui %21 : i1 to i32
    %c0_i32_12 = arith.constant 0 : i32
    %23 = arith.cmpi ne, %22, %c0_i32_12 : i32
    scf.if %23 {
      %c0_13 = arith.constant 0 : index
      %c0_14 = arith.constant 0 : index
      %24 = vector.load %arg6[%c0_13, %c0_14] : memref<128x128xf32, #tpu.memory_space<vmem>>, vector<128x128xf32>
      %c0_15 = arith.constant 0 : index
      %c0_16 = arith.constant 0 : index
      %25 = vector.load %arg5[%c0_15, %c0_16] : memref<128x128xf32, #tpu.memory_space<vmem>>, vector<128x128xf32>
      tpu.vector_store %arg5[%c0_15, %c0_16], %24 {strides = array<i32>} : memref<128x128xf32, #tpu.memory_space<vmem>>, vector<128x128xf32>,
    } else {
    }
    return
  }
  func.func @transform_0(%arg0: i32, %arg1: i32) -> (i32, i32) {
    %c0_i32 = arith.constant 0 : i32
    %c0_i32_0 = arith.constant 0 : i32
    return %arg0, %c0_i32 : i32, i32
  }
  func.func @transform_1(%arg0: i32, %arg1: i32) -> (i32, i32) {
    %c0_i32 = arith.constant 0 : i32
    %c0_i32_0 = arith.constant 0 : i32
    return %c0_i32, %arg1 : i32, i32
  }
  func.func @transform_2(%arg0: i32, %arg1: i32) -> (i32, i32) {
    %c0_i32 = arith.constant 0 : i32
    %c0_i32_0 = arith.constant 0 : i32
    return %arg1, %c0_i32 : i32, i32
  }
  func.func @transform_3(%arg0: i32, %arg1: i32) -> (i32, i32) {
    %c0_i32 = arith.constant 0 : i32
    %c0_i32_0 = arith.constant 0 : i32
    return %arg0, %c0_i32 : i32, i32
  }
}

</mosaic_0001>

<bundles_post_ra>
// kernel: tpu_custom_call.1
= control target key start
LH: loop header
LB: loop body
LE: loop exit
PB: predicated region body
PF: predicated region fallthrough
CT: control target
= control target key end

     0   :  { %s2109_s0 = inlined_call_operand.hbm [shape: bf16[256,128], index: 0, kind: input, shape index: {}]   ;;  %s2110_s1 = inlined_call_operand.hbm [shape: bf16[128,768], index: 1, kind: input, shape index: {}]   ;;  %s2111_s2 = inlined_call_operand.hbm [shape: bf16[384,128], index: 2, kind: input, shape index: {}]   ;;  %s2112_s3 = inlined_call_operand.hbm [shape: f32[256,128], index: 3, kind: output, shape index: {}]  }
   0x1   :  { %2125 = sst [smem:[#allocation22_spill]] %s2109_s0 }
   0x2   :  { %2126 = sst [smem:[#allocation23_spill]] %s2110_s1 }
   0x3   :  { %2127 = sst [smem:[#allocation24_spill]] %s2112_s3 }
   0x4   :  { %8 = vsyncpa [#allocation4], 0 }
   0x5   :  { %10 = vsyncpa [#allocation4 + $0x1], 0 }
   0x6   :  { %11 = vsyncpa [#allocation7], 0 }
   0x7   :  { %13 = vsyncpa [#allocation7 + $0x1], 0 }
   0x8   :  { %14 = vsyncpa [#allocation5], 0 }
   0x9   :  { %16 = vsyncpa [#allocation5 + $0x1], 0  ;;  %s1691_s12 = smov 0   ;;  %s1693_s13 = smov 0  }
   0xa   :  { %s1695_s14 = smov 0   ;;  %s1697_s15 = smov 0  }
   0xb   :  { %s1699_s16 = smov 0   ;;  %s1701_s17 = smov 0  }
   0xc   :  { %s1703_s18 = smov 0   ;;  %s1705_s19 = smov 0  }
   0xd   :  { %s1707_s20 = smov 0   ;;  %s1709_s21 = smov 0  }
   0xe   :  { %s1711_s22 = smov 0  }
   0xf LB: > { %2128 = sst [smem:[#allocation13_spill]] %s1624_s14  ;;  %s31_s23 = sadd.s32 1, %s1648_s20  ;;  %s1656_s22 = sphi %s1711_s22, %s22_s22   ;;  %s1652_s21 = sphi %s1709_s21, %s2162_s21   ;;  %s1648_s20 = sphi %s1707_s20, %s2168_s20   ;;  %s1644_s19 = sphi %s1705_s19, %s2160_s19   ;;  %s1640_s18 = sphi %s1703_s18, %s2167_s18   ;;  %s1636_s17 = sphi %s1701_s17, %s2159_s17   ;;  %s1632_s16 = sphi %s1699_s16, %s2166_s16   ;;  %s1628_s15 = sphi %s1697_s15, %s2165_s15   ;;  %s1624_s14 = sphi %s1695_s14, %s2157_s14   ;;  %s1620_s13 = sphi %s1693_s13, %s2164_s13   ;;  %s1616_s12 = sphi %s1691_s12, %s2163_s12  }
  0x10   : > { %2129 = sst [smem:[#allocation14_spill]] %s1636_s17  ;;  %p49_p0 = scmp.eq.s32.totalorder %s1656_s22, 0 }
  0x11   : > { %2130 = sst [smem:[#allocation15_spill]] %s1652_s21  ;;  %p1748_p1 = scmp.ge.s32.totalorder %s31_s23, 3 }
  0x12   : > { %s67_s25 = sadd.s32 1, %s1624_s14  ;;  %p74_p2 = scmp.ne.s32.totalorder %s1624_s14, %s1620_s13 }
  0x13   : > { %p80_p3 = scmp.ne.s32.totalorder %s1620_s13, %s1616_s12  ;;  %s2170_s23 = smov (%p1748_p1, %s31_s23), 0 }
  0x14   : > { %2132 = sst [smem:[#allocation16_spill]] %s2170_s23  ;;  %p76_p4 = por %p74_p2, %p49_p0 }
  0x15   : > { %s64_s26 = ssub.s32 %s1648_s20, %s2170_s23  ;;  %p2115_p5 = scmp.lt.s32.totalorder %s1656_s22, 6 }
  0x16   : > { %p65_p6 = scmp.eq.s32.totalorder %s64_s26, 0  ;;  %s177_s27 = sand.u32 1, %s1656_s22  }
  0x17   : > { %s2114_s28 = sand.u32 1, %s1624_s14   ;;  %s1172_s4 = sshll.u32 %s1648_s20, 7 }
  0x18   : > { %s1769_s29 = scalar_select %p65_p6, %s1624_s14, %s67_s25  }
  0x19   : > { %s1105_s30 = sshll.u32 %s2114_s28, 7  ;;  %s2134_s1 = sld [smem:[#allocation23_spill]] }
  0x1a   : > { %2133 = sst [smem:[#allocation17_spill]] %s1769_s29  ;;  %s181_s8 = scalar_lea.vmem [#allocation6], %s1105_s30 }
  0x1b   : > { %s188_s9 = sshll.u32 %s181_s8, 4  ;;  %p1779_p7 = pnand %p2115_p5, %p76_p4  ;;  %s189_s9 = int_to_ptr.vmem [resolvable:$true] %s188_s9 }
  0x1c   : > { %p1111_p8 = scmp.ge.s32.totalorder %s1656_s22, 1  ;;  %s1784_s11 = scalar_lea.sflag [#allocation7], %s177_s27 }
  0x1d   : > { %p2113_p9 = pneg %p1779_p7  ;;  %s1461_s25 = scalar_lea.vmem %s189_s9, 2048 }
  0x1e   : > { %p1462_p10 = scmp.ne.s32.totalorder %s189_s9, %s1461_s25  ;;  %s1658_s26 = smov [#allocation6]  }
  0x1f   : > { %s187_s7 = scalar_lea.hbm %s2134_s1, %s1172_s4  ;;  %s1466_s30 = sshll.u32 %s1658_s26, 4  ;;  %s1467_s30 = int_to_ptr.vmem [resolvable:$false] %s1466_s30 }
  0x20   : > { %p1464_p11 = pnand %p1462_p10, %p2113_p9  ;;  %s1468_s4 = scalar_lea.vmem %s1467_s30, 4096 }
  0x21   : > { %p1469_p13 = scmp.lt.s32.totalorder %s189_s9, %s1467_s30  ;;  %p1470_p2 = scmp.lt.s32.totalorder %s1468_s4, %s1461_s25 }
  0x22   : > { %p1465_p12 = pneg %p1464_p11 }
  0x23   : > { %p1471_p4 = por %p1470_p2, %p1469_p13 }
  0x25   : > { %p1472_p6 = pnand %p1471_p4, %p1465_p12 }
  0x27   : > { %1475 = shalt.err (!%p1472_p6)
}
  0x28   : > { %s1659_s5 = smov 384   ;;  %s1660_s27 = smov 128  }
  0x29   : > { %s1661_s6 = smov 8   ;;  %p217_p10 = scmp.lt.s32.totalorder %s1656_s22, 7 }
  0x2a   : > { %1237 = dma.hbm_to_vmem [thread:$0]  (!%p1779_p7), %s187_s7, 2048, %s189_s9, %s1784_s11, %s1659_s5, %s1660_s27, %s1661_s6  }
  0x2b   : > { %p1797_p11 = pnand %p1111_p8, %p217_p10  ;;  %s1802_s25 = sadd.s32 4294967295, %s1656_s22  }
  0x2c   : > { %s1099_s26 = sadd.s32 4294967294, %s1656_s22   ;;  %s34_s30 = sadd.s32 1, %s1652_s21 }
  0x2d   : > { %s41_s4 = sadd.s32 1, %s1636_s17  ;;  %s2172_s30 = smov (!%p1748_p1, %s34_s30), %s1652_s21 }
  0x2e   : > { %p48_p12 = scmp.ne.s32.totalorder %s1636_s17, %s1632_s16  ;;  %p54_p13 = scmp.ne.s32.totalorder %s1632_s16, %s1628_s15 }
  0x2f   : > { %p36_p8 = scmp.ge.s32.totalorder %s2172_s30, 2  ;;  %p55_p2 = scmp.eq.s32.totalorder %s1802_s25, 0 }
  0x30   : > { %p1817_p4 = por %p49_p0, %p48_p12  ;;  %p130_p6 = scmp.eq.s32.totalorder %s1802_s25, 5 }
  0x31   : > { %s2174_s30 = smov (%p36_p8, %s2172_s30), 0  ;;  %p1827_p1 = por %p55_p2, %p54_p13 }
  0x32   : > { %2138 = sst [smem:[#allocation18_spill]] %s2174_s30  ;;  %p1834_p10 = por %p80_p3, %p55_p2 }
  0x33   : > { %s38_s5 = ssub.s32 %s1652_s21, %s2174_s30  ;;  %p1840_p0 = por %p130_p6, %p48_p12 }
  0x34   : > { %p39_p9 = scmp.eq.s32.totalorder %s38_s5, 0  ;;  %p136_p8 = scmp.eq.s32.totalorder %s1099_s26, 5 }
  0x35   : > { %s2141_s27 = scalar_select %p1840_p0, 1, 0 }
  0x36   : > { %s156_s6 = sand.u32 1, %s1636_s17   ;;  %s1171_s28 = sshll.u32 %s1652_s21, 10 }
  0x37   : > { %2142 = sst [smem:[#allocation19_spill]] %s2141_s27  ;;  %p1852_p5 = por %p136_p8, %p54_p13 }
  0x38   : > { %s1847_s1 = scalar_select %p39_p9, %s1636_s17, %s41_s4  }
  0x39   : > { %s2144_s23 = scalar_select %p1852_p5, 1, 0 }
  0x3a   : > { %2143 = sst [smem:[#allocation20_spill]] %s1847_s1  ;;  %s1102_s12 = sshll.u32 %s156_s6, 6 }
  0x3b   : > { %2145 = sst [smem:[#allocation21_spill]] %s2144_s23  ;;  %p2147_p3 = scmp.lt.s32.totalorder %s1656_s22, 6 }
  0x3c   : > { %s2146_s0 = sld [smem:[#allocation22_spill]]  ;;  %s160_s26 = scalar_lea.vmem [#allocation3], %s1102_s12 }
  0x3d   : > { %p1863_p12 = pnand %p2147_p3, %p1817_p4  ;;  %s167_s4 = sshll.u32 %s160_s26, 4  ;;  %s168_s4 = int_to_ptr.vmem [resolvable:$true] %s167_s4 }
  0x3e   : > { %s2149_s5 = sand.u32 1, %s1624_s14   ;;  %s157_s1 = scalar_lea.sflag [#allocation4], %s156_s6 }
  0x3f   : > { %s1108_s21 = sshll.u32 %s2149_s5, 6  ;;  %p1478_p9 = pneg %p1863_p12 }
  0x40   : > { %s1489_s17 = scalar_lea.vmem %s168_s4, 1024  ;;  %s1662_s3 = smov [#allocation3]  }
  0x41   : > { %p1490_p13 = scmp.ne.s32.totalorder %s168_s4, %s1489_s17 }
  0x42   : > { %s166_s30 = scalar_lea.hbm %s2146_s0, %s1171_s28  ;;  %s1494_s28 = sshll.u32 %s1662_s3, 4  ;;  %s1495_s28 = int_to_ptr.vmem [resolvable:$false] %s1494_s28 }
  0x43   : > { %p1492_p2 = pnand %p1490_p13, %p1478_p9  ;;  %s1496_s29 = scalar_lea.vmem %s1495_s28, 2048 }
  0x44   : > { %p1497_p4 = scmp.lt.s32.totalorder %s168_s4, %s1495_s28  ;;  %p1498_p8 = scmp.lt.s32.totalorder %s1496_s29, %s1489_s17 }
  0x45   : > { %p1493_p6 = pneg %p1492_p2 }
  0x46   : > { %p1499_p3 = por %p1498_p8, %p1497_p4 }
  0x48   : > { %p1500_p5 = pnand %p1499_p3, %p1493_p6 }
  0x4a   : > { %1503 = shalt.err (!%p1500_p5)
}
  0x4b   : > { %s1663_s7 = smov 64   ;;  %s1664_s6 = smov 4  }
  0x4c   : > { %1234 = dma.hbm_to_vmem [thread:$0]  (!%p1863_p12), %s166_s30, 1024, %s168_s4, %s157_s1, %s1663_s7, %s1663_s7, %s1664_s6  }
  0x4d   : > { %s1173_s12 = sshll.u32 %s1648_s20, 10  ;;  %s202_s3 = scalar_lea.vmem [#allocation8], %s1108_s21 }
  0x4e   : > { %s208_s0 = scalar_lea.hbm %s2111_s2, %s1173_s12  ;;  %s209_s14 = sshll.u32 %s202_s3, 4  ;;  %s210_s14 = int_to_ptr.vmem [resolvable:$true] %s209_s14 }
  0x4f   : > { %s1517_s28 = scalar_lea.vmem %s210_s14, 1024  ;;  %p2150_p13 = pneg %p1779_p7 }
  0x50   : > { %p1518_p9 = scmp.ne.s32.totalorder %s210_s14, %s1517_s28  ;;  %s1665_s17 = smov [#allocation8]  }
  0x51   : > { %s1522_s29 = sshll.u32 %s1665_s17, 4  ;;  %s1523_s29 = int_to_ptr.vmem [resolvable:$false] %s1522_s29 }
  0x52   : > { %p1520_p5 = pnand %p1518_p9, %p2150_p13  ;;  %s1524_s23 = scalar_lea.vmem %s1523_s29, 2048 }
  0x53   : > { %p1525_p6 = scmp.lt.s32.totalorder %s210_s14, %s1523_s29  ;;  %p1526_p12 = scmp.lt.s32.totalorder %s1524_s23, %s1517_s28 }
  0x54   : > { %p1521_p2 = pneg %p1520_p5 }
  0x55   : > { %p1527_p4 = por %p1526_p12, %p1525_p6 }
  0x57   : > { %p1528_p8 = pnand %p1527_p4, %p1521_p2 }
  0x59   : > { %1531 = shalt.err (!%p1528_p8)
}
  0x5a   : > { %1240 = dma.hbm_to_vmem [thread:$0]  (!%p1779_p7), %s208_s0, 1024, %s210_s14, %s1784_s11, %s1663_s7, %s1663_s7, %s1664_s6  }
  0x5b   : > { %221 = sbr.rel (%p1797_p11) target bundleno = 679 (0x2a7), region = 32  ;;  %s1886_s1 = sand.u32 (!%p1797_p11), 1, %s1632_s16  }
  0x5c   : > { %s1112_s21 = sshll.u32 (!%p1797_p11), %s1886_s1, 6  ;;  %s224_s30 = scalar_lea.sflag (!%p1797_p11), [#allocation4], %s1886_s1 }
  0x5d   : > { %s1890_s27 = scalar_lea.vmem (!%p1797_p11), [#allocation3], %s1112_s21 }
  0x60   : > { %1603 = dma.done.wait (%p1827_p1), %s224_s30, 1024  }
  0x61   : > { %1605 = vsyncadd (%p1827_p1), %s224_s30, 4294966272  ;;  %s232_s0 = sand.u32 1, %s1802_s25   ;;  %s234_s14 = sand.u32 1, %s1620_s13  }
  0x62   : > { %s1113_s23 = sshll.u32 %s234_s14, 7  ;;  %s233_s10 = scalar_lea.sflag [#allocation7], %s232_s0 }
  0x63   : > { %s1898_s11 = scalar_lea.vmem [#allocation6], %s1113_s23 }
  0x64   : > { %1607 = dma.done.wait (%p1834_p10), %s233_s10, 3072  }
  0x65   : > { %1609 = vsyncadd (%p1834_p10), %s233_s10, 4294964224  ;;  %s1114_s8 = sshll.u32 %s234_s14, 6  ;;  %s1115_s4 = sshll.u32 %s1886_s1, 7 }
  0x66   : > { %s1905_s7 = scalar_lea.vmem [#allocation8], %s1114_s8  ;;  %s1907_s24 = scalar_lea.vmem [#allocation9], %s1115_s4 }
  0x67   : > { %p1116_p7 = scmp.ne.s32.totalorder %s1640_s18, 0 }
  0x69   : > { %286 = sbr.rel (%p1116_p7) target bundleno = 119 (0x77), region = 48 }
  0x6e   : > { %v1666_v0 = vmov 0.0  }
  0x6f   : > { %287 = vst [vmem:[#allocation2 + $0x30] sm:$0xff] %v1666_v0  ;;  %288 = vst [vmem:[#allocation2] sm:$0xff] %v1666_v0 }
  0x70   : > { %289 = vst [vmem:[#allocation2 + $0x58] sm:$0xff] %v1666_v0  ;;  %290 = vst [vmem:[#allocation2 + $0x18] sm:$0xff] %v1666_v0 }
  0x71   : > { %291 = vst [vmem:[#allocation2 + $0x50] sm:$0xff] %v1666_v0  ;;  %292 = vst [vmem:[#allocation2 + $0x68] sm:$0xff] %v1666_v0 }
  0x72   : > { %293 = vst [vmem:[#allocation2 + $0x8] sm:$0xff] %v1666_v0  ;;  %294 = vst [vmem:[#allocation2 + $0x48] sm:$0xff] %v1666_v0 }
  0x73   : > { %295 = vst [vmem:[#allocation2 + $0x40] sm:$0xff] %v1666_v0  ;;  %296 = vst [vmem:[#allocation2 + $0x20] sm:$0xff] %v1666_v0 }
  0x74   : > { %297 = vst [vmem:[#allocation2 + $0x10] sm:$0xff] %v1666_v0  ;;  %298 = vst [vmem:[#allocation2 + $0x38] sm:$0xff] %v1666_v0 }
  0x75   : > { %299 = vst [vmem:[#allocation2 + $0x60] sm:$0xff] %v1666_v0  ;;  %300 = vst [vmem:[#allocation2 + $0x70] sm:$0xff] %v1666_v0 }
  0x76   : > { %301 = vst [vmem:[#allocation2 + $0x78] sm:$0xff] %v1666_v0  ;;  %302 = vst [vmem:[#allocation2 + $0x28] sm:$0xff] %v1666_v0 }
  0x77 PF: > { %v1344_v1 = vld [vmem:[%s1898_s11 + $0x74] ss:$8 sps:$4 sm:$0xff]   ;;  %v1346_v2 = vld [vmem:[%s1898_s11 + $0x70] ss:$8 sps:$4 sm:$0xff]   ;;  %v1667_v3 = vmov 0   ;;  %v1368_v18 = vld [vmem:[%s1890_s27] sm:$0xff]  }
  0x78   : > { %495 = vmatprep.mubr.bf16.mxu0 %v1667_v3  ;;  %463 = vmatprep.subr.bf16.mxu0 %v1344_v1  ;;  %v1347_v4 = vld [vmem:[%s1898_s11 + $0x64] ss:$8 sps:$4 sm:$0xff]   ;;  %v1349_v5 = vld [vmem:[%s1898_s11 + $0x60] ss:$8 sps:$4 sm:$0xff]   ;;  %v1350_v6 = vld [vmem:[%s1898_s11 + $0x54] ss:$8 sps:$4 sm:$0xff]  }
  0x79   : > { %464 = vmatpush1.bf16.msra.mxu0 %v1346_v2  ;;  %v1352_v7 = vld [vmem:[%s1898_s11 + $0x50] ss:$8 sps:$4 sm:$0xff]   ;;  %v1353_v8 = vld [vmem:[%s1898_s11 + $0x44] ss:$8 sps:$4 sm:$0xff]   ;;  %v1355_v9 = vld [vmem:[%s1898_s11 + $0x40] ss:$8 sps:$4 sm:$0xff]  }
  0x7a   : > { %465 = vmatprep.subr.bf16.mxu0 %v1347_v4  ;;  %v1356_v10 = vld [vmem:[%s1898_s11 + $0x34] ss:$8 sps:$4 sm:$0xff]   ;;  %v1358_v11 = vld [vmem:[%s1898_s11 + $0x30] ss:$8 sps:$4 sm:$0xff]   ;;  %v1359_v12 = vld [vmem:[%s1898_s11 + $0x24] ss:$8 sps:$4 sm:$0xff]  }
  0x7b   : > { %v1361_v13 = vld [vmem:[%s1898_s11 + $0x20] ss:$8 sps:$4 sm:$0xff]   ;;  %v1362_v14 = vld [vmem:[%s1898_s11 + $0x14] ss:$8 sps:$4 sm:$0xff]   ;;  %v1364_v15 = vld [vmem:[%s1898_s11 + $0x10] ss:$8 sps:$4 sm:$0xff]  }
  0x7c   : > { %v1365_v16 = vld [vmem:[%s1898_s11 + $0x4] ss:$8 sps:$4 sm:$0xff]   ;;  %v1367_v17 = vld [vmem:[%s1898_s11] ss:$8 sps:$4 sm:$0xff]   ;;  %v1370_v20 = vld [vmem:[%s1890_s27 + $0x10] sm:$0xff]   ;;  %p1165_p11 = scmp.ne.s32.totalorder %s1640_s18, 2 }
  0x7d   : > { %466 = vmatpush1.bf16.msra.mxu0 %v1349_v5  ;;  %v1369_v19 = vld [vmem:[%s1890_s27 + $0x8] sm:$0xff]   ;;  %v1371_v21 = vld [vmem:[%s1890_s27 + $0x18] sm:$0xff]   ;;  %v1372_v22 = vld [vmem:[%s1890_s27 + $0x20] sm:$0xff]  }
  0x7e   : > { %467 = vmatprep.subr.bf16.mxu0 %v1350_v6  ;;  %v1373_v23 = vld [vmem:[%s1890_s27 + $0x28] sm:$0xff]   ;;  %v1374_v24 = vld [vmem:[%s1890_s27 + $0x30] sm:$0xff]   ;;  %v1375_v25 = vld [vmem:[%s1890_s27 + $0x38] sm:$0xff]  }
  0x7f   : > { %v1376_v26 = vld [vmem:[%s1905_s7 + $0x38] sm:$0xff]   ;;  %v1377_v27 = vld [vmem:[%s1905_s7 + $0x30] sm:$0xff]   ;;  %v1378_v28 = vld [vmem:[%s1905_s7 + $0x28] sm:$0xff]  }
  0x80   : > { %1191 = vmatprep.subr.bf16.mxu1 %v1376_v26  ;;  %v1379_v29 = vld [vmem:[%s1905_s7 + $0x20] sm:$0xff]   ;;  %v1380_v30 = vld [vmem:[%s1905_s7 + $0x18] sm:$0xff]   ;;  %v1381_v31 = vld [vmem:[%s1905_s7 + $0x10] sm:$0xff]  }
  0x81   : > { %468 = vmatpush1.bf16.msra.mxu0 %v1352_v7  ;;  %1192 = vmatpush3.bf16.msra.mxu1 %v1376_v26  ;;  %v1382_v32 = vld [vmem:[%s1905_s7 + $0x8] sm:$0xff]   ;;  %v1383_v33 = vld [vmem:[%s1905_s7] sm:$0xff]  }
  0x82   : > { %469 = vmatprep.subr.bf16.mxu0 %v1353_v8  ;;  %1193 = vmatprep.subr.bf16.mxu1 %v1377_v27 }
  0x85   : > { %470 = vmatpush1.bf16.msra.mxu0 %v1355_v9  ;;  %1194 = vmatpush3.bf16.msra.mxu1 %v1377_v27 }
  0x86   : > { %471 = vmatprep.subr.bf16.mxu0 %v1356_v10  ;;  %1195 = vmatprep.subr.bf16.mxu1 %v1378_v28 }
  0x89   : > { %472 = vmatpush1.bf16.msra.mxu0 %v1358_v11  ;;  %1196 = vmatpush3.bf16.msra.mxu1 %v1378_v28 }
  0x8a   : > { %473 = vmatprep.subr.bf16.mxu0 %v1359_v12  ;;  %1197 = vmatprep.subr.bf16.mxu1 %v1379_v29 }
  0x8d   : > { %474 = vmatpush1.bf16.msra.mxu0 %v1361_v13  ;;  %1198 = vmatpush3.bf16.msra.mxu1 %v1379_v29 }
  0x8e   : > { %475 = vmatprep.subr.bf16.mxu0 %v1362_v14  ;;  %1199 = vmatprep.subr.bf16.mxu1 %v1380_v30 }
  0x91   : > { %476 = vmatpush1.bf16.msra.mxu0 %v1364_v15  ;;  %1200 = vmatpush3.bf16.msra.mxu1 %v1380_v30 }
  0x92   : > { %477 = vmatprep.subr.bf16.mxu0 %v1365_v16  ;;  %1201 = vmatprep.subr.bf16.mxu1 %v1381_v31 }
  0x95   : > { %478 = vmatpush1.bf16.msra.mxu0 %v1367_v17  ;;  %1202 = vmatpush3.bf16.msra.mxu1 %v1381_v31 }
  0x96   : > { %1203 = vmatprep.subr.bf16.mxu1 %v1382_v32 }
  0x98   : > { %496 = vmatmul.mubr.bf16.vlgmr.msra.gmra.mxu0 %v1368_v18 }
  0x99   : > { %505 = vmatprep.mubr.bf16.mxu0 %v1667_v3  ;;  %1204 = vmatpush3.bf16.msra.mxu1 %v1382_v32 }
  0x9a   : > { %1205 = vmatprep.subr.bf16.mxu1 %v1383_v33 }
  0x9d   : > { %1206 = vmatpush3.bf16.msra.mxu1 %v1383_v33 }
  0xa0   : > { %506 = vmatmul.mubr.bf16.gmra.mxu0 %v1369_v19 }
  0xa1   : > { %515 = vmatprep.mubr.bf16.mxu0 %v1667_v3 }
  0xa8   : > { %516 = vmatmul.mubr.bf16.gmra.mxu0 %v1370_v20 }
  0xa9   : > { %525 = vmatprep.mubr.bf16.mxu0 %v1667_v3 }
  0xb0   : > { %526 = vmatmul.mubr.bf16.gmra.mxu0 %v1371_v21 }
  0xb1   : > { %535 = vmatprep.mubr.bf16.mxu0 %v1667_v3 }
  0xb8   : > { %536 = vmatmul.mubr.bf16.gmra.mxu0 %v1372_v22 }
  0xb9   : > { %545 = vmatprep.mubr.bf16.mxu0 %v1667_v3 }
  0xc0   : > { %546 = vmatmul.mubr.bf16.gmra.mxu0 %v1373_v23 }
  0xc1   : > { %555 = vmatprep.mubr.bf16.mxu0 %v1667_v3 }
  0xc8   : > { %556 = vmatmul.mubr.bf16.gmra.mxu0 %v1374_v24 }
  0xc9   : > { %565 = vmatprep.mubr.bf16.mxu0 %v1667_v3 }
  0xd0   : > { %566 = vmatmul.mubr.bf16.gmra.mxu0 %v1375_v25 }
 0x158   : > { %v497_v34 = vpop.f32.mrf.mxu0 }
 0x159   : > { %v1141_v35 = vmul.f32 -1.442695, %v497_v34 }
 0x15a   : > { %v499_v36 = vpop.f32.mrf.mxu0 }
 0x15b   : > { %1384 = vpow2.f32 %v1141_v35 }
 0x15c   : > { %v501_v37 = vpop.f32.mrf.mxu0 }
 0x15d   : > { %v1142_v38 = vmul.f32 -1.442695, %v501_v37 }
 0x15e   : > { %v503_v39 = vpop.f32.mrf.mxu0 }
 0x15f   : > { %1386 = vpow2.f32 %v1142_v38 }
 0x160   : > { %v1942_v40 = vpop.f32.mrf.mxu0 }
 0x161   : > { %v1143_v41 = vmul.f32 -1.442695, %v1942_v40 }
 0x162   : > { %v1945_v42 = vpop.f32.mrf.mxu0 }
 0x163   : > { %1388 = vpow2.f32 %v1143_v41 }
 0x164   : > { %v1947_v43 = vpop.f32.mrf.mxu0 }
 0x165   : > { %v1144_v44 = vmul.f32 -1.442695, %v1947_v43 }
 0x166   : > { %v1950_v45 = vpop.f32.mrf.mxu0 }
 0x167   : > { %1390 = vpow2.f32 %v1144_v44 }
 0x168   : > { %v1385_v46 = vpop.eup %1384  ;;  %v1952_v47 = vpop.f32.mrf.mxu0 }
 0x169   : > { %v624_v48 = vadd.f32 1.0, %v1385_v46  ;;  %v1145_v49 = vmul.f32 -1.442695, %v1952_v47 }
 0x16a   : > { %v1955_v50 = vpop.f32.mrf.mxu0 }
 0x16b   : > { %1392 = vrcp.f32 %v624_v48 }
 0x16c   : > { %v1387_v51 = vpop.eup %1386  ;;  %1394 = vpow2.f32 %v1145_v49  ;;  %v1957_v52 = vpop.f32.mrf.mxu0 }
 0x16d   : > { %v625_v53 = vadd.f32 1.0, %v1387_v51  ;;  %v1146_v54 = vmul.f32 -1.442695, %v1957_v52 }
 0x16e   : > { %v1960_v55 = vpop.f32.mrf.mxu0 }
 0x16f   : > { %1396 = vrcp.f32 %v625_v53 }
 0x170   : > { %v1389_v56 = vpop.eup %1388  ;;  %1398 = vpow2.f32 %v1146_v54  ;;  %v1962_v57 = vpop.f32.mrf.mxu0 }
 0x171   : > { %v626_v58 = vadd.f32 1.0, %v1389_v56  ;;  %v1147_v59 = vmul.f32 -1.442695, %v1962_v57 }
 0x172   : > { %v1965_v60 = vpop.f32.mrf.mxu0 }
 0x173   : > { %1400 = vrcp.f32 %v626_v58 }
 0x174   : > { %v1391_v61 = vpop.eup %1390  ;;  %1402 = vpow2.f32 %v1147_v59  ;;  %v1967_v62 = vpop.f32.mrf.mxu0 }
 0x175   : > { %v627_v63 = vadd.f32 1.0, %v1391_v61  ;;  %v1148_v0 = vmul.f32 -1.442695, %v1967_v62 }
 0x176   : > { %v1970_v1 = vpop.f32.mrf.mxu0 }
 0x177   : > { %1404 = vrcp.f32 %v627_v63 }
 0x178   : > { %v1393_v2 = vpop.eup %1392  ;;  %1406 = vpow2.f32 %v1148_v0  ;;  %v1972_v3 = vpop.f32.mrf.mxu0 }
 0x179   : > { %v1395_v4 = vpop.eup %1394  ;;  %v1149_v5 = vmul.f32 -1.442695, %v1972_v3  ;;  %v672_v8 = vmul.f32 %v1393_v2, %v497_v34 }
 0x17a   : > { %v628_v6 = vadd.f32 1.0, %v1395_v4  ;;  %v1975_v7 = vpop.f32.mrf.mxu0 }
 0x17b   : > { %1408 = vpow2.f32 %v1149_v5  ;;  %v688_v16 = vmul.f32 %v672_v8, %v499_v36 }
 0x17c   : > { %v1397_v9 = vpop.eup %1396  ;;  %1410 = vrcp.f32 %v628_v6  ;;  %v1977_v10 = vpop.f32.mrf.mxu0 }
 0x17d   : > { %v1399_v11 = vpop.eup %1398  ;;  %v673_v12 = vmul.f32 %v1397_v9, %v501_v37  ;;  %v1150_v13 = vmul.f32 -1.442695, %v1977_v10 }
 0x17e   : > { %v629_v14 = vadd.f32 1.0, %v1399_v11  ;;  %v1980_v15 = vpop.f32.mrf.mxu0 }
 0x17f   : > { %v689_v17 = vmul.f32 %v673_v12, %v503_v39  ;;  %1412 = vpow2.f32 %v1150_v13 }
 0x180   : > { %v1401_v18 = vpop.eup %1400  ;;  %1414 = vrcp.f32 %v629_v14  ;;  %v1982_v19 = vpop.f32.mrf.mxu0 }
 0x181   : > { %v1403_v20 = vpop.eup %1402  ;;  %v1151_v21 = vmul.f32 -1.442695, %v1982_v19  ;;  %v720_v22 = vpack.c.bf16 %v689_v17, %v688_v16  ;;  %v674_v25 = vmul.f32 %v1401_v18, %v1942_v40 }
 0x182   : > { %v630_v23 = vadd.f32 1.0, %v1403_v20  ;;  %v1985_v24 = vpop.f32.mrf.mxu0 }
 0x183   : > { %1416 = vpow2.f32 %v1151_v21  ;;  %1207 = vmatprep.mubr.bf16.mxu1 %v720_v22  ;;  %v690_v33 = vmul.f32 %v674_v25, %v1945_v42 }
 0x184   : > { %v1405_v26 = vpop.eup %1404  ;;  %1418 = vrcp.f32 %v630_v23  ;;  %v1988_v27 = vpop.f32.mrf.mxu0 }
 0x185   : > { %v1407_v28 = vpop.eup %1406  ;;  %v675_v29 = vmul.f32 %v1405_v26, %v1947_v43  ;;  %v1152_v30 = vmul.f32 -1.442695, %v1988_v27 }
 0x186   : > { %v631_v31 = vadd.f32 1.0, %v1407_v28  ;;  %v1992_v32 = vpop.f32.mrf.mxu0 }
 0x187   : > { %v691_v34 = vmul.f32 %v675_v29, %v1950_v45  ;;  %1420 = vpow2.f32 %v1152_v30 }
 0x188   : > { %v1409_v35 = vpop.eup %1408  ;;  %1422 = vrcp.f32 %v631_v31  ;;  %v1996_v36 = vpop.f32.mrf.mxu0 }
 0x189   : > { %v1411_v37 = vpop.eup %1410  ;;  %v721_v38 = vpack.c.bf16 %v691_v34, %v690_v33  ;;  %v632_v39 = vadd.f32 1.0, %v1409_v35  ;;  %v1153_v40 = vmul.f32 -1.442695, %v1996_v36 }
 0x18a   : > { %v1999_v41 = vpop.f32.mrf.mxu0  ;;  %v676_v44 = vmul.f32 %v1411_v37, %v1952_v47 }
 0x18b   : > { %1424 = vrcp.f32 %v632_v39  ;;  %1208 = vmatmul.mubr.bf16.vlgmr.msra.gmra.mxu1 %v721_v38 }
 0x18c   : > { %v1413_v43 = vpop.eup %1412  ;;  %1426 = vpow2.f32 %v1153_v40  ;;  %v2002_v42 = vpop.f32.mrf.mxu0  ;;  %v692_v54 = vmul.f32 %v676_v44, %v1955_v50 }
 0x18d   : > { %v1415_v45 = vpop.eup %1414  ;;  %v633_v46 = vadd.f32 1.0, %v1413_v43  ;;  %v1154_v48 = vmul.f32 -1.442695, %v2002_v42 }
 0x18e   : > { %v677_v49 = vmul.f32 %v1415_v45, %v1957_v52  ;;  %v563_v51 = vpop.f32.mrf.mxu0  ;;  %v706_v45 = vld [vmem:[#allocation2 + $0x58] sm:$0xff] }
 0x18f   : > { %1428 = vrcp.f32 %v633_v46 }
 0x190   : > { %v1417_v53 = vpop.eup %1416  ;;  %v693_v56 = vmul.f32 %v677_v49, %v1960_v55  ;;  %1430 = vpow2.f32 %v1154_v48  ;;  %v567_v58 = vpop.f32.mrf.mxu0 }
 0x191   : > { %v1419_v59 = vpop.eup %1418  ;;  %v634_v47 = vadd.f32 1.0, %v1417_v53  ;;  %v1155_v61 = vmul.f32 -1.442695, %v567_v58  ;;  %v705_v53 = vld [vmem:[#allocation2] sm:$0xff] }
 0x192   : > { %v722_v63 = vpack.c.bf16 %v693_v56, %v692_v54  ;;  %v569_v0 = vpop.f32.mrf.mxu0  ;;  %v678_v4 = vmul.f32 %v1419_v59, %v1962_v57  ;;  %v710_v59 = vld [vmem:[#allocation2 + $0x8] sm:$0xff] }
 0x193   : > { %1432 = vrcp.f32 %v634_v47 }
 0x194   : > { %v1421_v2 = vpop.eup %1420  ;;  %1434 = vpow2.f32 %v1155_v61  ;;  %1211 = vmatprep.mubr.bf16.mxu1 %v722_v63  ;;  %v571_v52 = vpop.f32.mrf.mxu0  ;;  %v694_v9 = vmul.f32 %v678_v4, %v1965_v60  ;;  %v708_v61 = vld [vmem:[#allocation2 + $0x50] sm:$0xff] }
 0x195   : > { %v1423_v5 = vpop.eup %1422  ;;  %v635_v6 = vadd.f32 1.0, %v1421_v2  ;;  %v1156_v8 = vmul.f32 -1.442695, %v571_v52  ;;  %v711_v2 = vld [vmem:[#allocation2 + $0x48] sm:$0xff] }
 0x196   : > { %v679_v50 = vmul.f32 %v1423_v5, %v1967_v62  ;;  %v573_v40 = vpop.f32.mrf.mxu0  ;;  %v709_v5 = vld [vmem:[#allocation2 + $0x68] sm:$0xff] }
 0x197   : > { %1436 = vrcp.f32 %v635_v6 }
 0x198   : > { %v1425_v55 = vpop.eup %1424  ;;  %v695_v11 = vmul.f32 %v679_v50, %v1970_v1  ;;  %1438 = vpow2.f32 %v1156_v8 }
 0x199   : > { %v1427_v12 = vpop.eup %1426  ;;  %v680_v57 = vmul.f32 %v1425_v55, %v1972_v3  ;;  %v714_v55 = vld [vmem:[#allocation2 + $0x10] sm:$0xff] }
 0x19a   : > { %v723_v13 = vpack.c.bf16 %v695_v11, %v694_v9  ;;  %v636_v14 = vadd.f32 1.0, %v1427_v12  ;;  %v712_v11 = vld [vmem:[#allocation2 + $0x40] sm:$0xff] }
 0x19b   : > { %v696_v62 = vmul.f32 %v680_v57, %v1975_v7 }
 0x19c   : > { %v1429_v16 = vpop.eup %1428  ;;  %1440 = vrcp.f32 %v636_v14  ;;  %1212 = vmatmul.mubr.bf16.gmra.mxu1 %v723_v13  ;;  %v715_v14 = vld [vmem:[#allocation2 + $0x38] sm:$0xff] }
 0x19d   : > { %v1431_v17 = vpop.eup %1430  ;;  %v681_v18 = vmul.f32 %v1429_v16, %v1977_v10 }
 0x19e   : > { %v637_v20 = vadd.f32 1.0, %v1431_v17  ;;  %v713_v17 = vld [vmem:[#allocation2 + $0x20] sm:$0xff] }
 0x19f   : > { %v697_v21 = vmul.f32 %v681_v18, %v1980_v15 }
 0x1a0   : > { %v1433_v60 = vpop.eup %1432  ;;  %1442 = vrcp.f32 %v637_v20 }
 0x1a1   : > { %v1435_v1 = vpop.eup %1434  ;;  %v724_v22 = vpack.c.bf16 %v697_v21, %v696_v62  ;;  %v682_v25 = vmul.f32 %v1433_v60, %v1982_v19  ;;  %v718_v21 = vld [vmem:[#allocation2 + $0x78] sm:$0xff] }
 0x1a2   : > { %v638_v23 = vadd.f32 1.0, %v1435_v1  ;;  %v716_v1 = vld [vmem:[#allocation2 + $0x60] sm:$0xff] }
 0x1a3   : > { %1215 = vmatprep.mubr.bf16.mxu1 %v724_v22  ;;  %v698_v10 = vmul.f32 %v682_v25, %v1985_v24  ;;  %v719_v25 = vld [vmem:[#allocation2 + $0x28] sm:$0xff] }
 0x1a4   : > { %v1437_v3 = vpop.eup %1436  ;;  %1444 = vrcp.f32 %v638_v23 }
 0x1a5   : > { %v1439_v26 = vpop.eup %1438  ;;  %v683_v28 = vmul.f32 %v1437_v3, %v1988_v27 }
 0x1a6   : > { %v639_v29 = vadd.f32 1.0, %v1439_v26 }
 0x1a7   : > { %v699_v7 = vmul.f32 %v683_v28, %v1992_v32  ;;  %v717_v28 = vld [vmem:[#allocation2 + $0x70] sm:$0xff] }
 0x1a8   : > { %1446 = vrcp.f32 %v639_v29 }
 0x1a9   : > { %v1441_v15 = vpop.eup %1440  ;;  %v725_v30 = vpack.c.bf16 %v699_v7, %v698_v10 }
 0x1aa   : > { %v684_v31 = vmul.f32 %v1441_v15, %v1996_v36  ;;  %v704_v36 = vld [vmem:[#allocation2 + $0x30] sm:$0xff] }
 0x1ab   : > { %1216 = vmatmul.mubr.bf16.gmra.mxu1 %v725_v30 }
 0x1ac   : > { %v700_v34 = vmul.f32 %v684_v31, %v1999_v41 }
 0x1ad   : > { %v1443_v33 = vpop.eup %1442 }
 0x1ae   : > { %v685_v19 = vmul.f32 %v1443_v33, %v2002_v42  ;;  %v707_v42 = vld [vmem:[#allocation2 + $0x18] sm:$0xff] }
 0x1b0   : > { %v701_v35 = vmul.f32 %v685_v19, %v563_v51 }
 0x1b1   : > { %v1445_v37 = vpop.eup %1444 }
 0x1b2   : > { %v726_v38 = vpack.c.bf16 %v701_v35, %v700_v34  ;;  %v686_v27 = vmul.f32 %v1445_v37, %v567_v58 }
 0x1b4   : > { %1219 = vmatprep.mubr.bf16.mxu1 %v726_v38  ;;  %v702_v32 = vmul.f32 %v686_v27, %v569_v0 }
 0x1b5   : > { %v1447_v39 = vpop.eup %1446 }
 0x1b6   : > { %v687_v24 = vmul.f32 %v1447_v39, %v571_v52 }
 0x1b8   : > { %v703_v43 = vmul.f32 %v687_v24, %v573_v40 }
 0x1ba   : > { %v727_v44 = vpack.c.bf16 %v703_v43, %v702_v32 }
 0x1bc   : > { %1220 = vmatmul.mubr.bf16.gmra.mxu1 %v727_v44 }
 0x24b   : > { %v1209_v46 = vpop.f32.mrf.mxu1 }
 0x24c   : > { %v891_v48 = vadd.f32 %v1209_v46, %v706_v45 }
 0x24d   : > { %v826_v49 = vpop.f32.mrf.mxu1 }
 0x24e   : > { %907 = vst [vmem:[#allocation2 + $0x58] sm:$0xff] %v891_v48  ;;  %v889_v41 = vadd.f32 %v826_v49, %v704_v36 }
 0x24f   : > { %v1210_v51 = vpop.f32.mrf.mxu1 }
 0x250   : > { %905 = vst [vmem:[#allocation2 + $0x30] sm:$0xff] %v889_v41  ;;  %v892_v54 = vadd.f32 %v1210_v51, %v707_v42 }
 0x251   : > { %v829_v56 = vpop.f32.mrf.mxu1 }
 0x252   : > { %908 = vst [vmem:[#allocation2 + $0x18] sm:$0xff] %v892_v54  ;;  %v890_v58 = vadd.f32 %v829_v56, %v705_v53 }
 0x254   : > { %906 = vst [vmem:[#allocation2] sm:$0xff] %v890_v58 }
 0x25c   : > { %v1213_v47 = vpop.f32.mrf.mxu1 }
 0x25d   : > { %v895_v63 = vadd.f32 %v1213_v47, %v710_v59 }
 0x25e   : > { %v842_v0 = vpop.f32.mrf.mxu1 }
 0x25f   : > { %911 = vst [vmem:[#allocation2 + $0x8] sm:$0xff] %v895_v63  ;;  %v893_v4 = vadd.f32 %v842_v0, %v708_v61 }
 0x260   : > { %v1214_v52 = vpop.f32.mrf.mxu1 }
 0x261   : > { %909 = vst [vmem:[#allocation2 + $0x50] sm:$0xff] %v893_v4  ;;  %v896_v6 = vadd.f32 %v1214_v52, %v711_v2 }
 0x262   : > { %v845_v8 = vpop.f32.mrf.mxu1 }
 0x263   : > { %912 = vst [vmem:[#allocation2 + $0x48] sm:$0xff] %v896_v6  ;;  %v894_v50 = vadd.f32 %v845_v8, %v709_v5 }
 0x265   : > { %910 = vst [vmem:[#allocation2 + $0x68] sm:$0xff] %v894_v50 }
 0x26b   : > { %v1217_v9 = vpop.f32.mrf.mxu1 }
 0x26c   : > { %v899_v12 = vadd.f32 %v1217_v9, %v714_v55 }
 0x26d   : > { %v858_v13 = vpop.f32.mrf.mxu1 }
 0x26e   : > { %915 = vst [vmem:[#allocation2 + $0x10] sm:$0xff] %v899_v12  ;;  %v897_v57 = vadd.f32 %v858_v13, %v712_v11 }
 0x26f   : > { %v1218_v16 = vpop.f32.mrf.mxu1 }
 0x270   : > { %913 = vst [vmem:[#allocation2 + $0x40] sm:$0xff] %v897_v57  ;;  %v900_v18 = vadd.f32 %v1218_v16, %v715_v14 }
 0x271   : > { %v861_v20 = vpop.f32.mrf.mxu1 }
 0x272   : > { %916 = vst [vmem:[#allocation2 + $0x38] sm:$0xff] %v900_v18  ;;  %v898_v62 = vadd.f32 %v861_v20, %v713_v17 }
 0x274   : > { %914 = vst [vmem:[#allocation2 + $0x20] sm:$0xff] %v898_v62 }
 0x27c   : > { %v1221_v60 = vpop.f32.mrf.mxu1 }
 0x27d   : > { %v903_v22 = vadd.f32 %v1221_v60, %v718_v21 }
 0x27e   : > { %v874_v23 = vpop.f32.mrf.mxu1 }
 0x27f   : > { %919 = vst [vmem:[#allocation2 + $0x78] sm:$0xff] %v903_v22  ;;  %v901_v3 = vadd.f32 %v874_v23, %v716_v1 }
 0x280   : > { %v1222_v26 = vpop.f32.mrf.mxu1 }
 0x281   : > { %917 = vst [vmem:[#allocation2 + $0x60] sm:$0xff] %v901_v3  ;;  %v904_v29 = vadd.f32 %v1222_v26, %v719_v25  ;;  %924 = sbr.rel (%p1165_p11) target bundleno = 655 (0x28f), region = 52 }
 0x282   : > { %v877_v10 = vpop.f32.mrf.mxu1 }
 0x283   : > { %920 = vst [vmem:[#allocation2 + $0x28] sm:$0xff] %v904_v29  ;;  %v902_v7 = vadd.f32 %v877_v10, %v717_v28 }
 0x285   : > { %918 = vst [vmem:[#allocation2 + $0x70] sm:$0xff] %v902_v7 }
 0x286   : > { %v925_v15 = vld [vmem:[#allocation2 + $0x30] sm:$0xff]  ;;  %v926_v30 = vld [vmem:[#allocation2] sm:$0xff]  ;;  %v927_v31 = vld [vmem:[#allocation2 + $0x58] sm:$0xff] }
 0x287   : > { %941 = vst [vmem:[%s1907_s24] sm:$0xff] %v925_v15  ;;  %942 = vst [vmem:[%s1907_s24 + $0x8] sm:$0xff] %v926_v30  ;;  %v928_v33 = vld [vmem:[#allocation2 + $0x18] sm:$0xff]  ;;  %v929_v19 = vld [vmem:[#allocation2 + $0x50] sm:$0xff] }
 0x288   : > { %943 = vst [vmem:[%s1907_s24 + $0x10] sm:$0xff] %v927_v31  ;;  %v930_v34 = vld [vmem:[#allocation2 + $0x68] sm:$0xff]  ;;  %944 = vst [vmem:[%s1907_s24 + $0x18] sm:$0xff] %v928_v33  ;;  %v933_v38 = vld [vmem:[#allocation2 + $0x40] sm:$0xff] }
 0x289   : > { %945 = vst [vmem:[%s1907_s24 + $0x20] sm:$0xff] %v929_v19  ;;  %946 = vst [vmem:[%s1907_s24 + $0x28] sm:$0xff] %v930_v34  ;;  %v931_v35 = vld [vmem:[#allocation2 + $0x8] sm:$0xff]  ;;  %v934_v27 = vld [vmem:[#allocation2 + $0x20] sm:$0xff] }
 0x28a   : > { %v932_v37 = vld [vmem:[#allocation2 + $0x48] sm:$0xff]  ;;  %947 = vst [vmem:[%s1907_s24 + $0x30] sm:$0xff] %v931_v35  ;;  %949 = vst [vmem:[%s1907_s24 + $0x40] sm:$0xff] %v933_v38  ;;  %v935_v39 = vld [vmem:[#allocation2 + $0x10] sm:$0xff] }
 0x28b   : > { %948 = vst [vmem:[%s1907_s24 + $0x38] sm:$0xff] %v932_v37  ;;  %v936_v24 = vld [vmem:[#allocation2 + $0x38] sm:$0xff]  ;;  %950 = vst [vmem:[%s1907_s24 + $0x48] sm:$0xff] %v934_v27  ;;  %v937_v40 = vld [vmem:[#allocation2 + $0x60] sm:$0xff] }
 0x28c   : > { %951 = vst [vmem:[%s1907_s24 + $0x50] sm:$0xff] %v935_v39  ;;  %952 = vst [vmem:[%s1907_s24 + $0x58] sm:$0xff] %v936_v24  ;;  %v938_v32 = vld [vmem:[#allocation2 + $0x70] sm:$0xff]  ;;  %v939_v43 = vld [vmem:[#allocation2 + $0x78] sm:$0xff] }
 0x28d   : > { %953 = vst [vmem:[%s1907_s24 + $0x60] sm:$0xff] %v937_v40  ;;  %954 = vst [vmem:[%s1907_s24 + $0x68] sm:$0xff] %v938_v32  ;;  %v940_v44 = vld [vmem:[#allocation2 + $0x28] sm:$0xff] }
 0x28e   : > { %955 = vst [vmem:[%s1907_s24 + $0x70] sm:$0xff] %v939_v43  ;;  %956 = vst [vmem:[%s1907_s24 + $0x78] sm:$0xff] %v940_v44 }
 0x28f PF: > { %s1174_s25 = sshll.u32 %s1644_s19, 11  ;;  %s2152_s12 = sld [smem:[#allocation24_spill]] }
 0x290   : > { %s971_s3 = sshll.u32 %s1907_s24, 4  ;;  %s958_s28 = scalar_lea.sflag [#allocation5], %s1886_s1  ;;  %s2047_s3 = int_to_ptr.vmem [resolvable:$true] %s971_s3 }
 0x291   : > { %s1532_s17 = scalar_lea.vmem %s2047_s3, 2048  ;;  %s1668_s29 = smov [#allocation9]  }
 0x292   : > { %p1533_p1 = scmp.ne.s32.totalorder %s2047_s3, %s1532_s17  ;;  %s1536_s21 = sshll.u32 %s1668_s29, 4  ;;  %s1537_s21 = int_to_ptr.vmem [resolvable:$false] %s1536_s21 }
 0x293   : > { %s1538_s19 = scalar_lea.vmem %s1537_s21, 4096  ;;  %p1539_p9 = scmp.lt.s32.totalorder %s2047_s3, %s1537_s21 }
 0x294   : > { %p1534_p10 = pnand %p1533_p1, %p1840_p0  ;;  %p1540_p13 = scmp.lt.s32.totalorder %s1538_s19, %s1532_s17 }
 0x295   : > { %s2153_s26 = smov %s2152_s12  ;;  %s2044_s5 = scalar_lea.hbm %s2152_s12, %s1174_s25 }
 0x296   : > { %p1535_p3 = pneg %p1534_p10  ;;  %p1541_p5 = por %p1540_p13, %p1539_p9 }
 0x298   : > { %p1542_p2 = pnand %p1541_p5, %p1535_p3 }
 0x29a   : > { %1545 = shalt.err (!%p1542_p2)
}
 0x29b   : > { %s1546_s30 = scalar_lea.hbm %s2044_s5, 2048  ;;  %s1550_s14 = scalar_lea.hbm %s2153_s26, 4096 }
 0x29c   : > { %p1547_p6 = scmp.ne.s32.totalorder %s2044_s5, %s1546_s30  ;;  %p1551_p8 = scmp.lt.s32.totalorder %s2044_s5, %s2153_s26 }
 0x29d   : > { %p1552_p7 = scmp.lt.s32.totalorder %s1550_s14, %s1546_s30 }
 0x29e   : > { %p1548_p12 = pnand %p1547_p6, %p1840_p0 }
 0x29f   : > { %p1553_p11 = por %p1552_p7, %p1551_p8 }
 0x2a0   : > { %p1549_p4 = pneg %p1548_p12 }
 0x2a2   : > { %p1554_p1 = pnand %p1553_p11, %p1549_p4 }
 0x2a4   : > { %1557 = shalt.err (!%p1554_p1)
}
 0x2a5   : > { %s1669_s11 = smov 128   ;;  %s1670_s8 = smov 8  }
 0x2a6   : > { %1229 = dma.vmem_to_hbm [thread:$0]  (%p1840_p0), %s2047_s3, 2048, %s2044_s5, %s958_s28, %s1669_s11, %s1669_s11, %s1670_s8  }
 0x2a7 PF: > { %s2154_s4 = sld [smem:[#allocation21_spill]]  ;;  %p1246_p10 = scmp.ge.s32.totalorder %s1656_s22, 2 }
 0x2a8   : > { %s986_s7 = sand.u32 1, %s1628_s15  }
 0x2a9   : > { %s987_s24 = scalar_lea.sflag [#allocation5], %s986_s7 }
 0x2ad   : > { %p2155_p3 = scmp.ne.s32.totalorder %s2154_s4, 0 }
 0x2af   : > { %p1242_p9 = pnand %p1246_p10, %p2155_p3 }
 0x2b1   : > { %p1243_p13 = pneg %p1242_p9 }
 0x2b3   : > { %1611 = dma.done.wait (%p1243_p13), %s987_s24, 2048  }
 0x2b4   : > { %1613 = vsyncadd (%p1243_p13), %s987_s24, 4294965248  ;;  %s22_s22 = sadd.s32 1, %s1656_s22   ;;  %s2156_s25 = sld [smem:[#allocation13_spill]] }
 0x2b5   : > { %p19_p5 = scmp.ge.s32.totalorder %s22_s22, 8   ;;  %s2157_s14 = sld [smem:[#allocation17_spill]] }
 0x2b6   : > { %s2158_s1 = sld [smem:[#allocation14_spill]]  ;;  %s2163_s12 = smov %s1620_s13 }
 0x2b7   : > { %s2159_s17 = sld [smem:[#allocation20_spill]]  ;;  %s2165_s15 = smov %s1632_s16 }
 0x2b8   : > { %s2160_s19 = sld [smem:[#allocation15_spill]]  ;;  %s2167_s18 = smov %s1648_s20 }
 0x2b9   : > { %s2161_s9 = sld [smem:[#allocation16_spill]] }
 0x2ba   : > { %s2162_s21 = sld [smem:[#allocation18_spill]]  ;;  %s2164_s13 = smov %s2156_s25 }
 0x2bb   :  { %21 = sbr.rel (!%p19_p5) target bundleno = 15 (0xf), region = 109 }
 0x2bc   : > { %s2166_s16 = smov %s2158_s1 }
 0x2bf   : > { %s2168_s20 = smov %s2161_s9 }
 0x2c0   :  { %992 = vsyncpa [#allocation4], 1 }
 0x2c1   :  { %994 = vsyncpa [#allocation4 + $0x1], 1 }
 0x2c2   :  { %995 = vsyncpa [#allocation7], 1 }
 0x2c3   :  { %997 = vsyncpa [#allocation7 + $0x1], 1 }
 0x2c4   :  { %998 = vsyncpa [#allocation5], 1 }
 0x2c5   :  { %1000 = vsyncpa [#allocation5 + $0x1], 1 }

</bundles_post_ra>
